<compile_context>
chip_gen: v7x
topology: tpu7x:2x2x1
jax: 0.10.0
libtpu: 0.0.40
codegen_flags: <defaults>
</compile_context>

<pallas_src>
import functools

import numpy as np
import jax
import jax.numpy as jnp
from jax import lax
from jax.experimental import pallas as pl
from jax.experimental.pallas import tpu as pltpu


def _resblock_kernel(x_ref, w1_ref, w2_ref, w3_ref, mask_ref,
                     b1_ref, b2_ref, b3_ref, o_ref, *, W):
    C, L = x_ref.shape                  # channels on sublanes, bt*H*W pixels on lanes
    x = x_ref[...]
    xf = x.astype(jnp.float32)
    mask = mask_ref[...]                # (9, L) 0/1 tap validity (= the conv's zero pad)

    def conv3x3(h, w_ref, shift):
        # 9 accumulating tap matmuls; no im2col scratch round-trip.
        acc = jnp.dot(w_ref[4], h.astype(jnp.bfloat16),      # center tap: no roll/mask
                      preferred_element_type=jnp.float32)
        for k in range(9):
            if k == 4:
                continue
            s = (k // 3 - 1) * W + (k % 3 - 1)                # lane offset of tap k
            t = pltpu.roll(h, shift=(-s) % L, axis=1)
            t = (t * mask[k:k + 1, :]).astype(jnp.bfloat16)   # zero out-of-image taps
            acc = acc + jnp.dot(w_ref[k], t, preferred_element_type=jnp.float32)
        return acc + shift

    # conv1x1 (C -> Cm) + shift + ReLU   (BN scale pre-folded into the weight rows)
    h1 = jnp.dot(w1_ref[...], x.astype(jnp.bfloat16), preferred_element_type=jnp.float32)
    h1 = jnp.maximum(h1 + b1_ref[...], 0.0)
    # conv3x3 (Cm -> Cm, pad 1) + shift + ReLU
    h2 = jnp.maximum(conv3x3(h1, w2_ref, b2_ref[...]), 0.0)
    # conv3x3 (Cm -> C, pad 1) + shift
    h3 = conv3x3(h2, w3_ref, b3_ref[...])
    # residual add + final ReLU, lane-dense (C, L) store
    o_ref[...] = jnp.maximum(xf + h3, 0.0).astype(o_ref.dtype)


def _pick_batch_tile(N, C, HW, block_budget_bytes=4 << 20):
    """Largest divisor of N giving a >=2-step grid (megacore / pipelining) while keeping
    one f32 activation block under the budget."""
    best = 1
    for bt in range(1, N + 1):
        if N % bt:
            continue
        if N >= 2 and N // bt < 2:
            continue
        if C * bt * HW * 4 > block_budget_bytes:
            continue
        best = bt
    return best


def resblock_nchw(x_nchw, params, *, batch_tile=None):
    """PyTorch-convention entry point: x is (N, C, H, W), f32 (or bf16 for the low-HBM path)."""
    N, C, H, W = x_nchw.shape
    w1, w2, w3, s1, b1, s2, b2, s3, b3 = params
    Cm = w1.shape[0]
    HW = H * W
    assert HW % 128 == 0, "H*W must be a multiple of 128 (pad spatially in the caller)"
    # TODO(synk): add wrapper-side spatial padding for non-128-multiple H*W.

    bt = _pick_batch_tile(N, C, HW) if batch_tile is None else batch_tile
    assert N % bt == 0, "batch_tile must divide N"
    steps = N // bt
    L = bt * HW

    # Batch-on-lanes layout: (N, C, H, W) -> (C, N*H*W). One-time wrapper transpose.
    x = jnp.transpose(x_nchw.reshape(N, C, HW), (1, 0, 2)).reshape(C, N * HW)

    # Fold BN scales into the conv weights (per output channel) on the host; pack the 3x3
    # kernels as (9, Cout, Cin) so tap k is a clean full-tile slice in the kernel.
    w1k = (w1 * s1[:, None]).astype(jnp.bfloat16)                                # (Cm, C)
    w2k = (jnp.transpose(w2, (0, 1, 3, 2)).reshape(9, Cm, Cm)
           * s2[None, :, None]).astype(jnp.bfloat16)                             # (9, Cm, Cm)
    w3k = (jnp.transpose(w3, (0, 1, 3, 2)).reshape(9, C, Cm)
           * s3[None, :, None]).astype(jnp.bfloat16)                             # (9, C, Cm)

    # 0/1 validity mask of the 9 taps, (9, bt*HW) only (broadcast over channels in-kernel,
    # tiled over the bt images sharing the lane block). Built once on host.
    hh, ww = np.meshgrid(np.arange(H), np.arange(W), indexing="ij")
    rows = []
    for k in range(9):
        dy, dx = k // 3 - 1, k % 3 - 1
        ok = ((hh + dy >= 0) & (hh + dy < H) & (ww + dx >= 0) & (ww + dx < W)).reshape(HW)
        rows.append(np.tile(ok, bt))
    mask = jnp.asarray(np.stack(rows, axis=0).astype(np.float32))                # (9, L)

    colv = lambda v: v.reshape(-1, 1).astype(jnp.float32)
    b1c, b2c, b3c = colv(b1), colv(b2), colv(b3)

    args = (x, w1k, w2k, w3k, mask, b1c, b2c, b3c)

    def full(a):
        return pl.BlockSpec(a.shape, lambda n: (0,) * a.ndim)    # resident, DMA'd once

    in_specs = [pl.BlockSpec((C, L), lambda n: (0, n))] + [full(a) for a in args[1:]]

    # VMEM budget: double-buffered in/out activation blocks + resident constants.
    act_bytes = C * L * x.dtype.itemsize
    out_bytes = C * L * x_nchw.dtype.itemsize
    const_bytes = sum(int(a.size) * a.dtype.itemsize for a in args[1:])
    vmem_limit = int(min(max(2 * (act_bytes + out_bytes) + 2 * const_bytes + (8 << 20),
                             16 << 20), 48 << 20))

    flops = int(2 * N * HW * (Cm * C + 9 * Cm * Cm + 9 * Cm * C))
    bytes_accessed = int(N * C * HW * (x.dtype.itemsize + x_nchw.dtype.itemsize) + const_bytes)

    y = pl.pallas_call(
        functools.partial(_resblock_kernel, W=W),
        out_shape=jax.ShapeDtypeStruct((C, N * HW), x_nchw.dtype),
        grid_spec=pltpu.PrefetchScalarGridSpec(
            num_scalar_prefetch=0,
            grid=(steps,),
            in_specs=in_specs,
            out_specs=pl.BlockSpec((C, L), lambda n: (0, n)),
        ),
        compiler_params=pltpu.CompilerParams(
            dimension_semantics=("parallel",),
            vmem_limit_bytes=vmem_limit),
        cost_estimate=pl.CostEstimate(flops=flops, transcendentals=0,
                                      bytes_accessed=bytes_accessed),
    )(*args)
    return jnp.transpose(y.reshape(C, N, HW), (1, 0, 2)).reshape(N, C, H, W)


def make_params(key, channel):
    """Conv weights: w1 (Cout,Cin) for the 1x1; w2/w3 HWIO. Inference BatchNorm folded
    into per-channel scale/shift vectors."""
    cm = channel // 4
    eps = 1e-5
    ks = jax.random.split(key, 15)

    def bn_fold(kg, kb, km, kv, c):
        gamma = 1.0 + 0.1 * jax.random.normal(kg, (c,), jnp.float32)
        beta = 0.1 * jax.random.normal(kb, (c,), jnp.float32)
        mean = 0.1 * jax.random.normal(km, (c,), jnp.float32)
        var = jnp.abs(jax.random.normal(kv, (c,), jnp.float32)) + 0.5
        scale = gamma / jnp.sqrt(var + eps)
        shift = beta - mean * scale
        return scale, shift

    w1 = 0.2 * jax.random.normal(ks[0], (cm, channel), jnp.float32)
    w2 = 0.2 * jax.random.normal(ks[1], (3, 3, cm, cm), jnp.float32)
    w3 = 0.2 * jax.random.normal(ks[2], (3, 3, cm, channel), jnp.float32)
    s1, b1 = bn_fold(ks[3], ks[4], ks[5], ks[6], cm)
    s2, b2 = bn_fold(ks[7], ks[8], ks[9], ks[10], cm)
    s3, b3 = bn_fold(ks[11], ks[12], ks[13], ks[14], channel)
    return (w1, w2, w3, s1, b1, s2, b2, s3, b3)


def resblock_reference_nchw(x, params, matmul_dtype=jnp.float32):
    """Pure-JAX (XLA conv) reference with the BN scale folded into the conv weights exactly
    as the kernel packs them; matmul_dtype=bfloat16 mirrors the kernel's bf16 MXU operands
    with f32 accumulation."""
    w1, w2, w3, s1, b1, s2, b2, s3, b3 = params
    C = x.shape[1]
    Cm = w1.shape[0]
    dn = ("NCHW", "HWIO", "NCHW")

    w1f = w1 * s1[:, None]                 # (Cm, C)      output rows scaled
    w2f = w2 * s2[None, None, None, :]     # (3,3,Cm,Cm)  output channel (last dim) scaled
    w3f = w3 * s3[None, None, None, :]     # (3,3,Cm,C)

    def conv(h, w, pad):
        return lax.conv_general_dilated(
            h.astype(matmul_dtype), w.astype(matmul_dtype), (1, 1), pad,
            dimension_numbers=dn, preferred_element_type=jnp.float32)

    shift = lambda h, b: h + b.reshape(1, -1, 1, 1)

    h = conv(x, jnp.transpose(w1f).reshape(1, 1, C, Cm), "VALID")
    h = jnp.maximum(shift(h, b1), 0.0)
    h = conv(h, w2f, "SAME")
    h = jnp.maximum(shift(h, b2), 0.0)
    h = conv(h, w3f, "SAME")
    h = shift(h, b3)
    return jnp.maximum(x + h, 0.0)


if __name__ == "__main__":
    key = jax.random.PRNGKey(0)
    kx, kp = jax.random.split(key)

    N, C, H, W = 2, 16, 16, 16          # channel=16 -> bottleneck channel=4
    x = jax.random.normal(kx, (N, C, H, W), jnp.float32)
    params = make_params(kp, C)

    out = jax.block_until_ready(resblock_nchw(x, params))
    assert out.shape == (N, C, H, W)

    # Logic check vs an XLA reference with identically folded/quantized weights
    # (remaining difference is accumulation order only).
    ref_bf16 = resblock_reference_nchw(x, params, matmul_dtype=jnp.bfloat16)
    err_bf16 = float(jnp.max(jnp.abs(out - ref_bf16)))
    assert err_bf16 < 1e-2, f"bf16-matched reference max err {err_bf16}"

    # Sanity check vs the pure-f32 reference (difference = bf16 MXU rounding).
    ref_f32 = resblock_reference_nchw(x, params, matmul_dtype=jnp.float32)
    err_f32 = float(jnp.max(jnp.abs(out - ref_f32)))
    assert err_f32 < 1.5e-1, f"f32 reference max err {err_f32}"

    print("KERNEL_OK")
</pallas_src>

<mosaic_0001>
module attributes {stable_mosaic.version = 11 : i64} {
  func.func @_resblock_kernel(%arg0: i32, %arg1: memref<16x256xf32, #tpu.memory_space<vmem>>, %arg2: memref<4x16xbf16, #tpu.memory_space<vmem>>, %arg3: memref<9x4x4xbf16, #tpu.memory_space<vmem>>, %arg4: memref<9x16x4xbf16, #tpu.memory_space<vmem>>, %arg5: memref<9x256xf32, #tpu.memory_space<vmem>>, %arg6: memref<4x1xf32, #tpu.memory_space<vmem>>, %arg7: memref<4x1xf32, #tpu.memory_space<vmem>>, %arg8: memref<16x1xf32, #tpu.memory_space<vmem>>, %arg9: memref<16x256xf32, #tpu.memory_space<vmem>>) attributes {dimension_semantics = [#tpu.dimension_semantics<parallel>], iteration_bounds = array<i64: 2>, scalar_prefetch = 0 : i64, scratch_operands = 0 : i64, tpu.core_type = #tpu.core_type<tc>, window_params = [{transform_indices = @transform_0, window_bounds = array<i64: 16, 256>}, {pipeline_mode = #tpu.pipeline_mode<synchronous>, transform_indices = @transform_1, window_bounds = array<i64: 4, 16>}, {pipeline_mode = #tpu.pipeline_mode<synchronous>, transform_indices = @transform_2, window_bounds = array<i64: 9, 4, 4>}, {pipeline_mode = #tpu.pipeline_mode<synchronous>, transform_indices = @transform_3, window_bounds = array<i64: 9, 16, 4>}, {pipeline_mode = #tpu.pipeline_mode<synchronous>, transform_indices = @transform_4, window_bounds = array<i64: 9, 256>}, {pipeline_mode = #tpu.pipeline_mode<synchronous>, transform_indices = @transform_5, window_bounds = array<i64: 4, 1>}, {pipeline_mode = #tpu.pipeline_mode<synchronous>, transform_indices = @transform_6, window_bounds = array<i64: 4, 1>}, {pipeline_mode = #tpu.pipeline_mode<synchronous>, transform_indices = @transform_7, window_bounds = array<i64: 16, 1>}, {transform_indices = @transform_8, window_bounds = array<i64: 16, 256>}]} {
    %c0 = arith.constant 0 : index
    %c0_0 = arith.constant 0 : index
    %0 = vector.load %arg1[%c0, %c0_0] : memref<16x256xf32, #tpu.memory_space<vmem>>, vector<16x256xf32>
    %c0_1 = arith.constant 0 : index
    %c0_2 = arith.constant 0 : index
    %1 = vector.load %arg5[%c0_1, %c0_2] : memref<9x256xf32, #tpu.memory_space<vmem>>, vector<9x256xf32>
    %c0_3 = arith.constant 0 : index
    %c0_4 = arith.constant 0 : index
    %2 = vector.load %arg2[%c0_3, %c0_4] : memref<4x16xbf16, #tpu.memory_space<vmem>>, vector<4x16xbf16>
    %3 = arith.truncf %0 : vector<16x256xf32> to vector<16x256xbf16>
    %cst = arith.constant dense<0.000000e+00> : vector<4x256xf32>
    %4 = tpu.matmul %2, %3, %cst {dimension_numbers = #tpu.dot_dimension_numbers<[1], [0], [0], [1], [0, 0, 1, 1], [], []>} : vector<4x16xbf16>, vector<16x256xbf16>, vector<4x256xf32> -> vector<4x256xf32>
    %c0_5 = arith.constant 0 : index
    %c0_6 = arith.constant 0 : index
    %5 = vector.load %arg6[%c0_5, %c0_6] : memref<4x1xf32, #tpu.memory_space<vmem>>, vector<4x1xf32>
    %6 = vector.broadcast %5 : vector<4x1xf32> to vector<4x256xf32>
    %7 = arith.addf %4, %6 : vector<4x256xf32>
    %cst_7 = arith.constant 0.000000e+00 : f32
    %8 = vector.broadcast %cst_7 : f32 to vector<4x256xf32>
    %9 = arith.maximumf %7, %8 : vector<4x256xf32>
    %c0_8 = arith.constant 0 : index
    %c0_9 = arith.constant 0 : index
    %10 = vector.load %arg7[%c0_8, %c0_9] : memref<4x1xf32, #tpu.memory_space<vmem>>, vector<4x1xf32>
    %c4 = arith.constant 4 : index
    %c0_10 = arith.constant 0 : index
    %c0_11 = arith.constant 0 : index
    %11 = vector.load %arg3[%c4, %c0_10, %c0_11] : memref<9x4x4xbf16, #tpu.memory_space<vmem>>, vector<1x4x4xbf16>
    %12 = vector.shape_cast %11 : vector<1x4x4xbf16> to vector<4x4xbf16>
    %13 = arith.truncf %9 : vector<4x256xf32> to vector<4x256xbf16>
    %cst_12 = arith.constant dense<0.000000e+00> : vector<4x256xf32>
    %14 = tpu.matmul %12, %13, %cst_12 {dimension_numbers = #tpu.dot_dimension_numbers<[1], [0], [0], [1], [0, 0, 1, 1], [], []>} : vector<4x4xbf16>, vector<4x256xbf16>, vector<4x256xf32> -> vector<4x256xf32>
    %c17_i32 = arith.constant 17 : i32
    %15 = tpu.dynamic_rotate %9 by %c17_i32 dim 1 : vector<4x256xf32>, i32 -> vector<4x256xf32>
    %16 = vector.extract_strided_slice %1 {offsets = [0, 0], sizes = [1, 256], strides = [1, 1]} : vector<9x256xf32> to vector<1x256xf32>
    %17 = vector.broadcast %16 : vector<1x256xf32> to vector<4x256xf32>
    %18 = arith.mulf %15, %17 : vector<4x256xf32>
    %19 = arith.truncf %18 : vector<4x256xf32> to vector<4x256xbf16>
    %c0_13 = arith.constant 0 : index
    %c0_14 = arith.constant 0 : index
    %c0_15 = arith.constant 0 : index
    %20 = vector.load %arg3[%c0_13, %c0_14, %c0_15] : memref<9x4x4xbf16, #tpu.memory_space<vmem>>, vector<1x4x4xbf16>
    %21 = vector.shape_cast %20 : vector<1x4x4xbf16> to vector<4x4xbf16>
    %cst_16 = arith.constant dense<0.000000e+00> : vector<4x256xf32>
    %22 = tpu.matmul %21, %19, %cst_16 {dimension_numbers = #tpu.dot_dimension_numbers<[1], [0], [0], [1], [0, 0, 1, 1], [], []>} : vector<4x4xbf16>, vector<4x256xbf16>, vector<4x256xf32> -> vector<4x256xf32>
    %23 = arith.addf %14, %22 : vector<4x256xf32>
    %c16_i32 = arith.constant 16 : i32
    %24 = tpu.dynamic_rotate %9 by %c16_i32 dim 1 : vector<4x256xf32>, i32 -> vector<4x256xf32>
    %25 = vector.extract_strided_slice %1 {offsets = [1, 0], sizes = [1, 256], strides = [1, 1]} : vector<9x256xf32> to vector<1x256xf32>
    %26 = vector.broadcast %25 : vector<1x256xf32> to vector<4x256xf32>
    %27 = arith.mulf %24, %26 : vector<4x256xf32>
    %28 = arith.truncf %27 : vector<4x256xf32> to vector<4x256xbf16>
    %c1 = arith.constant 1 : index
    %c0_17 = arith.constant 0 : index
    %c0_18 = arith.constant 0 : index
    %29 = vector.load %arg3[%c1, %c0_17, %c0_18] : memref<9x4x4xbf16, #tpu.memory_space<vmem>>, vector<1x4x4xbf16>
    %30 = vector.shape_cast %29 : vector<1x4x4xbf16> to vector<4x4xbf16>
    %cst_19 = arith.constant dense<0.000000e+00> : vector<4x256xf32>
    %31 = tpu.matmul %30, %28, %cst_19 {dimension_numbers = #tpu.dot_dimension_numbers<[1], [0], [0], [1], [0, 0, 1, 1], [], []>} : vector<4x4xbf16>, vector<4x256xbf16>, vector<4x256xf32> -> vector<4x256xf32>
    %32 = arith.addf %23, %31 : vector<4x256xf32>
    %c15_i32 = arith.constant 15 : i32
    %33 = tpu.dynamic_rotate %9 by %c15_i32 dim 1 : vector<4x256xf32>, i32 -> vector<4x256xf32>
    %34 = vector.extract_strided_slice %1 {offsets = [2, 0], sizes = [1, 256], strides = [1, 1]} : vector<9x256xf32> to vector<1x256xf32>
    %35 = vector.broadcast %34 : vector<1x256xf32> to vector<4x256xf32>
    %36 = arith.mulf %33, %35 : vector<4x256xf32>
    %37 = arith.truncf %36 : vector<4x256xf32> to vector<4x256xbf16>
    %c2 = arith.constant 2 : index
    %c0_20 = arith.constant 0 : index
    %c0_21 = arith.constant 0 : index
    %38 = vector.load %arg3[%c2, %c0_20, %c0_21] : memref<9x4x4xbf16, #tpu.memory_space<vmem>>, vector<1x4x4xbf16>
    %39 = vector.shape_cast %38 : vector<1x4x4xbf16> to vector<4x4xbf16>
    %cst_22 = arith.constant dense<0.000000e+00> : vector<4x256xf32>
    %40 = tpu.matmul %39, %37, %cst_22 {dimension_numbers = #tpu.dot_dimension_numbers<[1], [0], [0], [1], [0, 0, 1, 1], [], []>} : vector<4x4xbf16>, vector<4x256xbf16>, vector<4x256xf32> -> vector<4x256xf32>
    %41 = arith.addf %32, %40 : vector<4x256xf32>
    %c1_i32 = arith.constant 1 : i32
    %42 = tpu.dynamic_rotate %9 by %c1_i32 dim 1 : vector<4x256xf32>, i32 -> vector<4x256xf32>
    %43 = vector.extract_strided_slice %1 {offsets = [3, 0], sizes = [1, 256], strides = [1, 1]} : vector<9x256xf32> to vector<1x256xf32>
    %44 = vector.broadcast %43 : vector<1x256xf32> to vector<4x256xf32>
    %45 = arith.mulf %42, %44 : vector<4x256xf32>
    %46 = arith.truncf %45 : vector<4x256xf32> to vector<4x256xbf16>
    %c3 = arith.constant 3 : index
    %c0_23 = arith.constant 0 : index
    %c0_24 = arith.constant 0 : index
    %47 = vector.load %arg3[%c3, %c0_23, %c0_24] : memref<9x4x4xbf16, #tpu.memory_space<vmem>>, vector<1x4x4xbf16>
    %48 = vector.shape_cast %47 : vector<1x4x4xbf16> to vector<4x4xbf16>
    %cst_25 = arith.constant dense<0.000000e+00> : vector<4x256xf32>
    %49 = tpu.matmul %48, %46, %cst_25 {dimension_numbers = #tpu.dot_dimension_numbers<[1], [0], [0], [1], [0, 0, 1, 1], [], []>} : vector<4x4xbf16>, vector<4x256xbf16>, vector<4x256xf32> -> vector<4x256xf32>
    %50 = arith.addf %41, %49 : vector<4x256xf32>
    %c255_i32 = arith.constant 255 : i32
    %51 = tpu.dynamic_rotate %9 by %c255_i32 dim 1 : vector<4x256xf32>, i32 -> vector<4x256xf32>
    %52 = vector.extract_strided_slice %1 {offsets = [5, 0], sizes = [1, 256], strides = [1, 1]} : vector<9x256xf32> to vector<1x256xf32>
    %53 = vector.broadcast %52 : vector<1x256xf32> to vector<4x256xf32>
    %54 = arith.mulf %51, %53 : vector<4x256xf32>
    %55 = arith.truncf %54 : vector<4x256xf32> to vector<4x256xbf16>
    %c5 = arith.constant 5 : index
    %c0_26 = arith.constant 0 : index
    %c0_27 = arith.constant 0 : index
    %56 = vector.load %arg3[%c5, %c0_26, %c0_27] : memref<9x4x4xbf16, #tpu.memory_space<vmem>>, vector<1x4x4xbf16>
    %57 = vector.shape_cast %56 : vector<1x4x4xbf16> to vector<4x4xbf16>
    %cst_28 = arith.constant dense<0.000000e+00> : vector<4x256xf32>
    %58 = tpu.matmul %57, %55, %cst_28 {dimension_numbers = #tpu.dot_dimension_numbers<[1], [0], [0], [1], [0, 0, 1, 1], [], []>} : vector<4x4xbf16>, vector<4x256xbf16>, vector<4x256xf32> -> vector<4x256xf32>
    %59 = arith.addf %50, %58 : vector<4x256xf32>
    %c241_i32 = arith.constant 241 : i32
    %60 = tpu.dynamic_rotate %9 by %c241_i32 dim 1 : vector<4x256xf32>, i32 -> vector<4x256xf32>
    %61 = vector.extract_strided_slice %1 {offsets = [6, 0], sizes = [1, 256], strides = [1, 1]} : vector<9x256xf32> to vector<1x256xf32>
    %62 = vector.broadcast %61 : vector<1x256xf32> to vector<4x256xf32>
    %63 = arith.mulf %60, %62 : vector<4x256xf32>
    %64 = arith.truncf %63 : vector<4x256xf32> to vector<4x256xbf16>
    %c6 = arith.constant 6 : index
    %c0_29 = arith.constant 0 : index
    %c0_30 = arith.constant 0 : index
    %65 = vector.load %arg3[%c6, %c0_29, %c0_30] : memref<9x4x4xbf16, #tpu.memory_space<vmem>>, vector<1x4x4xbf16>
    %66 = vector.shape_cast %65 : vector<1x4x4xbf16> to vector<4x4xbf16>
    %cst_31 = arith.constant dense<0.000000e+00> : vector<4x256xf32>
    %67 = tpu.matmul %66, %64, %cst_31 {dimension_numbers = #tpu.dot_dimension_numbers<[1], [0], [0], [1], [0, 0, 1, 1], [], []>} : vector<4x4xbf16>, vector<4x256xbf16>, vector<4x256xf32> -> vector<4x256xf32>
    %68 = arith.addf %59, %67 : vector<4x256xf32>
    %c240_i32 = arith.constant 240 : i32
    %69 = tpu.dynamic_rotate %9 by %c240_i32 dim 1 : vector<4x256xf32>, i32 -> vector<4x256xf32>
    %70 = vector.extract_strided_slice %1 {offsets = [7, 0], sizes = [1, 256], strides = [1, 1]} : vector<9x256xf32> to vector<1x256xf32>
    %71 = vector.broadcast %70 : vector<1x256xf32> to vector<4x256xf32>
    %72 = arith.mulf %69, %71 : vector<4x256xf32>
    %73 = arith.truncf %72 : vector<4x256xf32> to vector<4x256xbf16>
    %c7 = arith.constant 7 : index
    %c0_32 = arith.constant 0 : index
    %c0_33 = arith.constant 0 : index
    %74 = vector.load %arg3[%c7, %c0_32, %c0_33] : memref<9x4x4xbf16, #tpu.memory_space<vmem>>, vector<1x4x4xbf16>
    %75 = vector.shape_cast %74 : vector<1x4x4xbf16> to vector<4x4xbf16>
    %cst_34 = arith.constant dense<0.000000e+00> : vector<4x256xf32>
    %76 = tpu.matmul %75, %73, %cst_34 {dimension_numbers = #tpu.dot_dimension_numbers<[1], [0], [0], [1], [0, 0, 1, 1], [], []>} : vector<4x4xbf16>, vector<4x256xbf16>, vector<4x256xf32> -> vector<4x256xf32>
    %77 = arith.addf %68, %76 : vector<4x256xf32>
    %c239_i32 = arith.constant 239 : i32
    %78 = tpu.dynamic_rotate %9 by %c239_i32 dim 1 : vector<4x256xf32>, i32 -> vector<4x256xf32>
    %79 = vector.extract_strided_slice %1 {offsets = [8, 0], sizes = [1, 256], strides = [1, 1]} : vector<9x256xf32> to vector<1x256xf32>
    %80 = vector.broadcast %79 : vector<1x256xf32> to vector<4x256xf32>
    %81 = arith.mulf %78, %80 : vector<4x256xf32>
    %82 = arith.truncf %81 : vector<4x256xf32> to vector<4x256xbf16>
    %c8 = arith.constant 8 : index
    %c0_35 = arith.constant 0 : index
    %c0_36 = arith.constant 0 : index
    %83 = vector.load %arg3[%c8, %c0_35, %c0_36] : memref<9x4x4xbf16, #tpu.memory_space<vmem>>, vector<1x4x4xbf16>
    %84 = vector.shape_cast %83 : vector<1x4x4xbf16> to vector<4x4xbf16>
    %cst_37 = arith.constant dense<0.000000e+00> : vector<4x256xf32>
    %85 = tpu.matmul %84, %82, %cst_37 {dimension_numbers = #tpu.dot_dimension_numbers<[1], [0], [0], [1], [0, 0, 1, 1], [], []>} : vector<4x4xbf16>, vector<4x256xbf16>, vector<4x256xf32> -> vector<4x256xf32>
    %86 = arith.addf %77, %85 : vector<4x256xf32>
    %87 = vector.broadcast %10 : vector<4x1xf32> to vector<4x256xf32>
    %88 = arith.addf %86, %87 : vector<4x256xf32>
    %cst_38 = arith.constant 0.000000e+00 : f32
    %89 = vector.broadcast %cst_38 : f32 to vector<4x256xf32>
    %90 = arith.maximumf %88, %89 : vector<4x256xf32>
    %c0_39 = arith.constant 0 : index
    %c0_40 = arith.constant 0 : index
    %91 = vector.load %arg8[%c0_39, %c0_40] : memref<16x1xf32, #tpu.memory_space<vmem>>, vector<16x1xf32>
    %c4_41 = arith.constant 4 : index
    %c0_42 = arith.constant 0 : index
    %c0_43 = arith.constant 0 : index
    %92 = vector.load %arg4[%c4_41, %c0_42, %c0_43] : memref<9x16x4xbf16, #tpu.memory_space<vmem>>, vector<1x16x4xbf16>
    %93 = vector.shape_cast %92 : vector<1x16x4xbf16> to vector<16x4xbf16>
    %94 = arith.truncf %90 : vector<4x256xf32> to vector<4x256xbf16>
    %cst_44 = arith.constant dense<0.000000e+00> : vector<16x256xf32>
    %95 = tpu.matmul %93, %94, %cst_44 {dimension_numbers = #tpu.dot_dimension_numbers<[1], [0], [0], [1], [0, 0, 1, 1], [], []>} : vector<16x4xbf16>, vector<4x256xbf16>, vector<16x256xf32> -> vector<16x256xf32>
    %c17_i32_45 = arith.constant 17 : i32
    %96 = tpu.dynamic_rotate %90 by %c17_i32_45 dim 1 : vector<4x256xf32>, i32 -> vector<4x256xf32>
    %97 = vector.extract_strided_slice %1 {offsets = [0, 0], sizes = [1, 256], strides = [1, 1]} : vector<9x256xf32> to vector<1x256xf32>
    %98 = vector.broadcast %97 : vector<1x256xf32> to vector<4x256xf32>
    %99 = arith.mulf %96, %98 : vector<4x256xf32>
    %100 = arith.truncf %99 : vector<4x256xf32> to vector<4x256xbf16>
    %c0_46 = arith.constant 0 : index
    %c0_47 = arith.constant 0 : index
    %c0_48 = arith.constant 0 : index
    %101 = vector.load %arg4[%c0_46, %c0_47, %c0_48] : memref<9x16x4xbf16, #tpu.memory_space<vmem>>, vector<1x16x4xbf16>
    %102 = vector.shape_cast %101 : vector<1x16x4xbf16> to vector<16x4xbf16>
    %cst_49 = arith.constant dense<0.000000e+00> : vector<16x256xf32>
    %103 = tpu.matmul %102, %100, %cst_49 {dimension_numbers = #tpu.dot_dimension_numbers<[1], [0], [0], [1], [0, 0, 1, 1], [], []>} : vector<16x4xbf16>, vector<4x256xbf16>, vector<16x256xf32> -> vector<16x256xf32>
    %104 = arith.addf %95, %103 : vector<16x256xf32>
    %c16_i32_50 = arith.constant 16 : i32
    %105 = tpu.dynamic_rotate %90 by %c16_i32_50 dim 1 : vector<4x256xf32>, i32 -> vector<4x256xf32>
    %106 = vector.extract_strided_slice %1 {offsets = [1, 0], sizes = [1, 256], strides = [1, 1]} : vector<9x256xf32> to vector<1x256xf32>
    %107 = vector.broadcast %106 : vector<1x256xf32> to vector<4x256xf32>
    %108 = arith.mulf %105, %107 : vector<4x256xf32>
    %109 = arith.truncf %108 : vector<4x256xf32> to vector<4x256xbf16>
    %c1_51 = arith.constant 1 : index
    %c0_52 = arith.constant 0 : index
    %c0_53 = arith.constant 0 : index
    %110 = vector.load %arg4[%c1_51, %c0_52, %c0_53] : memref<9x16x4xbf16, #tpu.memory_space<vmem>>, vector<1x16x4xbf16>
    %111 = vector.shape_cast %110 : vector<1x16x4xbf16> to vector<16x4xbf16>
    %cst_54 = arith.constant dense<0.000000e+00> : vector<16x256xf32>
    %112 = tpu.matmul %111, %109, %cst_54 {dimension_numbers = #tpu.dot_dimension_numbers<[1], [0], [0], [1], [0, 0, 1, 1], [], []>} : vector<16x4xbf16>, vector<4x256xbf16>, vector<16x256xf32> -> vector<16x256xf32>
    %113 = arith.addf %104, %112 : vector<16x256xf32>
    %c15_i32_55 = arith.constant 15 : i32
    %114 = tpu.dynamic_rotate %90 by %c15_i32_55 dim 1 : vector<4x256xf32>, i32 -> vector<4x256xf32>
    %115 = vector.extract_strided_slice %1 {offsets = [2, 0], sizes = [1, 256], strides = [1, 1]} : vector<9x256xf32> to vector<1x256xf32>
    %116 = vector.broadcast %115 : vector<1x256xf32> to vector<4x256xf32>
    %117 = arith.mulf %114, %116 : vector<4x256xf32>
    %118 = arith.truncf %117 : vector<4x256xf32> to vector<4x256xbf16>
    %c2_56 = arith.constant 2 : index
    %c0_57 = arith.constant 0 : index
    %c0_58 = arith.constant 0 : index
    %119 = vector.load %arg4[%c2_56, %c0_57, %c0_58] : memref<9x16x4xbf16, #tpu.memory_space<vmem>>, vector<1x16x4xbf16>
    %120 = vector.shape_cast %119 : vector<1x16x4xbf16> to vector<16x4xbf16>
    %cst_59 = arith.constant dense<0.000000e+00> : vector<16x256xf32>
    %121 = tpu.matmul %120, %118, %cst_59 {dimension_numbers = #tpu.dot_dimension_numbers<[1], [0], [0], [1], [0, 0, 1, 1], [], []>} : vector<16x4xbf16>, vector<4x256xbf16>, vector<16x256xf32> -> vector<16x256xf32>
    %122 = arith.addf %113, %121 : vector<16x256xf32>
    %c1_i32_60 = arith.constant 1 : i32
    %123 = tpu.dynamic_rotate %90 by %c1_i32_60 dim 1 : vector<4x256xf32>, i32 -> vector<4x256xf32>
    %124 = vector.extract_strided_slice %1 {offsets = [3, 0], sizes = [1, 256], strides = [1, 1]} : vector<9x256xf32> to vector<1x256xf32>
    %125 = vector.broadcast %124 : vector<1x256xf32> to vector<4x256xf32>
    %126 = arith.mulf %123, %125 : vector<4x256xf32>
    %127 = arith.truncf %126 : vector<4x256xf32> to vector<4x256xbf16>
    %c3_61 = arith.constant 3 : index
    %c0_62 = arith.constant 0 : index
    %c0_63 = arith.constant 0 : index
    %128 = vector.load %arg4[%c3_61, %c0_62, %c0_63] : memref<9x16x4xbf16, #tpu.memory_space<vmem>>, vector<1x16x4xbf16>
    %129 = vector.shape_cast %128 : vector<1x16x4xbf16> to vector<16x4xbf16>
    %cst_64 = arith.constant dense<0.000000e+00> : vector<16x256xf32>
    %130 = tpu.matmul %129, %127, %cst_64 {dimension_numbers = #tpu.dot_dimension_numbers<[1], [0], [0], [1], [0, 0, 1, 1], [], []>} : vector<16x4xbf16>, vector<4x256xbf16>, vector<16x256xf32> -> vector<16x256xf32>
    %131 = arith.addf %122, %130 : vector<16x256xf32>
    %c255_i32_65 = arith.constant 255 : i32
    %132 = tpu.dynamic_rotate %90 by %c255_i32_65 dim 1 : vector<4x256xf32>, i32 -> vector<4x256xf32>
    %133 = vector.extract_strided_slice %1 {offsets = [5, 0], sizes = [1, 256], strides = [1, 1]} : vector<9x256xf32> to vector<1x256xf32>
    %134 = vector.broadcast %133 : vector<1x256xf32> to vector<4x256xf32>
    %135 = arith.mulf %132, %134 : vector<4x256xf32>
    %136 = arith.truncf %135 : vector<4x256xf32> to vector<4x256xbf16>
    %c5_66 = arith.constant 5 : index
    %c0_67 = arith.constant 0 : index
    %c0_68 = arith.constant 0 : index
    %137 = vector.load %arg4[%c5_66, %c0_67, %c0_68] : memref<9x16x4xbf16, #tpu.memory_space<vmem>>, vector<1x16x4xbf16>
    %138 = vector.shape_cast %137 : vector<1x16x4xbf16> to vector<16x4xbf16>
    %cst_69 = arith.constant dense<0.000000e+00> : vector<16x256xf32>
    %139 = tpu.matmul %138, %136, %cst_69 {dimension_numbers = #tpu.dot_dimension_numbers<[1], [0], [0], [1], [0, 0, 1, 1], [], []>} : vector<16x4xbf16>, vector<4x256xbf16>, vector<16x256xf32> -> vector<16x256xf32>
    %140 = arith.addf %131, %139 : vector<16x256xf32>
    %c241_i32_70 = arith.constant 241 : i32
    %141 = tpu.dynamic_rotate %90 by %c241_i32_70 dim 1 : vector<4x256xf32>, i32 -> vector<4x256xf32>
    %142 = vector.extract_strided_slice %1 {offsets = [6, 0], sizes = [1, 256], strides = [1, 1]} : vector<9x256xf32> to vector<1x256xf32>
    %143 = vector.broadcast %142 : vector<1x256xf32> to vector<4x256xf32>
    %144 = arith.mulf %141, %143 : vector<4x256xf32>
    %145 = arith.truncf %144 : vector<4x256xf32> to vector<4x256xbf16>
    %c6_71 = arith.constant 6 : index
    %c0_72 = arith.constant 0 : index
    %c0_73 = arith.constant 0 : index
    %146 = vector.load %arg4[%c6_71, %c0_72, %c0_73] : memref<9x16x4xbf16, #tpu.memory_space<vmem>>, vector<1x16x4xbf16>
    %147 = vector.shape_cast %146 : vector<1x16x4xbf16> to vector<16x4xbf16>
    %cst_74 = arith.constant dense<0.000000e+00> : vector<16x256xf32>
    %148 = tpu.matmul %147, %145, %cst_74 {dimension_numbers = #tpu.dot_dimension_numbers<[1], [0], [0], [1], [0, 0, 1, 1], [], []>} : vector<16x4xbf16>, vector<4x256xbf16>, vector<16x256xf32> -> vector<16x256xf32>
    %149 = arith.addf %140, %148 : vector<16x256xf32>
    %c240_i32_75 = arith.constant 240 : i32
    %150 = tpu.dynamic_rotate %90 by %c240_i32_75 dim 1 : vector<4x256xf32>, i32 -> vector<4x256xf32>
    %151 = vector.extract_strided_slice %1 {offsets = [7, 0], sizes = [1, 256], strides = [1, 1]} : vector<9x256xf32> to vector<1x256xf32>
    %152 = vector.broadcast %151 : vector<1x256xf32> to vector<4x256xf32>
    %153 = arith.mulf %150, %152 : vector<4x256xf32>
    %154 = arith.truncf %153 : vector<4x256xf32> to vector<4x256xbf16>
    %c7_76 = arith.constant 7 : index
    %c0_77 = arith.constant 0 : index
    %c0_78 = arith.constant 0 : index
    %155 = vector.load %arg4[%c7_76, %c0_77, %c0_78] : memref<9x16x4xbf16, #tpu.memory_space<vmem>>, vector<1x16x4xbf16>
    %156 = vector.shape_cast %155 : vector<1x16x4xbf16> to vector<16x4xbf16>
    %cst_79 = arith.constant dense<0.000000e+00> : vector<16x256xf32>
    %157 = tpu.matmul %156, %154, %cst_79 {dimension_numbers = #tpu.dot_dimension_numbers<[1], [0], [0], [1], [0, 0, 1, 1], [], []>} : vector<16x4xbf16>, vector<4x256xbf16>, vector<16x256xf32> -> vector<16x256xf32>
    %158 = arith.addf %149, %157 : vector<16x256xf32>
    %c239_i32_80 = arith.constant 239 : i32
    %159 = tpu.dynamic_rotate %90 by %c239_i32_80 dim 1 : vector<4x256xf32>, i32 -> vector<4x256xf32>
    %160 = vector.extract_strided_slice %1 {offsets = [8, 0], sizes = [1, 256], strides = [1, 1]} : vector<9x256xf32> to vector<1x256xf32>
    %161 = vector.broadcast %160 : vector<1x256xf32> to vector<4x256xf32>
    %162 = arith.mulf %159, %161 : vector<4x256xf32>
    %163 = arith.truncf %162 : vector<4x256xf32> to vector<4x256xbf16>
    %c8_81 = arith.constant 8 : index
    %c0_82 = arith.constant 0 : index
    %c0_83 = arith.constant 0 : index
    %164 = vector.load %arg4[%c8_81, %c0_82, %c0_83] : memref<9x16x4xbf16, #tpu.memory_space<vmem>>, vector<1x16x4xbf16>
    %165 = vector.shape_cast %164 : vector<1x16x4xbf16> to vector<16x4xbf16>
    %cst_84 = arith.constant dense<0.000000e+00> : vector<16x256xf32>
    %166 = tpu.matmul %165, %163, %cst_84 {dimension_numbers = #tpu.dot_dimension_numbers<[1], [0], [0], [1], [0, 0, 1, 1], [], []>} : vector<16x4xbf16>, vector<4x256xbf16>, vector<16x256xf32> -> vector<16x256xf32>
    %167 = arith.addf %158, %166 : vector<16x256xf32>
    %168 = vector.broadcast %91 : vector<16x1xf32> to vector<16x256xf32>
    %169 = arith.addf %167, %168 : vector<16x256xf32>
    %170 = arith.addf %0, %169 : vector<16x256xf32>
    %cst_85 = arith.constant 0.000000e+00 : f32
    %171 = vector.broadcast %cst_85 : f32 to vector<16x256xf32>
    %172 = arith.maximumf %170, %171 : vector<16x256xf32>
    %c0_86 = arith.constant 0 : index
    %c0_87 = arith.constant 0 : index
    %173 = vector.load %arg9[%c0_86, %c0_87] : memref<16x256xf32, #tpu.memory_space<vmem>>, vector<16x256xf32>
    tpu.vector_store %arg9[%c0_86, %c0_87], %172 {strides = array<i32>} : memref<16x256xf32, #tpu.memory_space<vmem>>, vector<16x256xf32>,
    return
  }
  func.func @transform_0(%arg0: i32) -> (i32, i32) {
    %c0_i32 = arith.constant 0 : i32
    %c0_i32_0 = arith.constant 0 : i32
    return %c0_i32, %arg0 : i32, i32
  }
  func.func @transform_1(%arg0: i32) -> (i32, i32) {
    %c0_i32 = arith.constant 0 : i32
    %c0_i32_0 = arith.constant 0 : i32
    %c0_i32_1 = arith.constant 0 : i32
    return %c0_i32, %c0_i32_0 : i32, i32
  }
  func.func @transform_2(%arg0: i32) -> (i32, i32, i32) {
    %c0_i32 = arith.constant 0 : i32
    %c0_i32_0 = arith.constant 0 : i32
    %c0_i32_1 = arith.constant 0 : i32
    %c0_i32_2 = arith.constant 0 : i32
    return %c0_i32, %c0_i32_0, %c0_i32_1 : i32, i32, i32
  }
  func.func @transform_3(%arg0: i32) -> (i32, i32, i32) {
    %c0_i32 = arith.constant 0 : i32
    %c0_i32_0 = arith.constant 0 : i32
    %c0_i32_1 = arith.constant 0 : i32
    %c0_i32_2 = arith.constant 0 : i32
    return %c0_i32, %c0_i32_0, %c0_i32_1 : i32, i32, i32
  }
  func.func @transform_4(%arg0: i32) -> (i32, i32) {
    %c0_i32 = arith.constant 0 : i32
    %c0_i32_0 = arith.constant 0 : i32
    %c0_i32_1 = arith.constant 0 : i32
    return %c0_i32, %c0_i32_0 : i32, i32
  }
  func.func @transform_5(%arg0: i32) -> (i32, i32) {
    %c0_i32 = arith.constant 0 : i32
    %c0_i32_0 = arith.constant 0 : i32
    %c0_i32_1 = arith.constant 0 : i32
    return %c0_i32, %c0_i32_0 : i32, i32
  }
  func.func @transform_6(%arg0: i32) -> (i32, i32) {
    %c0_i32 = arith.constant 0 : i32
    %c0_i32_0 = arith.constant 0 : i32
    %c0_i32_1 = arith.constant 0 : i32
    return %c0_i32, %c0_i32_0 : i32, i32
  }
  func.func @transform_7(%arg0: i32) -> (i32, i32) {
    %c0_i32 = arith.constant 0 : i32
    %c0_i32_0 = arith.constant 0 : i32
    %c0_i32_1 = arith.constant 0 : i32
    return %c0_i32, %c0_i32_0 : i32, i32
  }
  func.func @transform_8(%arg0: i32) -> (i32, i32) {
    %c0_i32 = arith.constant 0 : i32
    %c0_i32_0 = arith.constant 0 : i32
    return %c0_i32, %arg0 : i32, i32
  }
}

</mosaic_0001>

<bundles_post_ra>
// kernel: tpu_custom_call.1
= control target key start
LH: loop header
LB: loop body
LE: loop exit
PB: predicated region body
PF: predicated region fallthrough
CT: control target
= control target key end

     0   :  { %13 = vsyncpa [#allocation4], 0  ;;  %s2617_s0 = inlined_call_operand.vmem [shape: f32[16,512], index: 0, kind: input, shape index: {}]   ;;  %s2618_s1 = inlined_call_operand.vmem [shape: bf16[4,16], index: 1, kind: input, shape index: {}]   ;;  %s2619_s2 = inlined_call_operand.vmem [shape: bf16[9,4,4], index: 2, kind: input, shape index: {}]   ;;  %s2620_s3 = inlined_call_operand.vmem [shape: bf16[9,16,4], index: 3, kind: input, shape index: {}]   ;;  %s2621_s4 = inlined_call_operand.vmem [shape: f32[9,256], index: 4, kind: input, shape index: {}]   ;;  %s2622_s5 = inlined_call_operand.vmem [shape: f32[4,1], index: 5, kind: input, shape index: {}]   ;;  %s2623_s6 = inlined_call_operand.vmem [shape: f32[4,1], index: 6, kind: input, shape index: {}]   ;;  %s2624_s7 = inlined_call_operand.vmem [shape: f32[16,1], index: 7, kind: input, shape index: {}]   ;;  %s2625_s8 = inlined_call_operand.hbm [shape: f32[16,512], index: 8, kind: output, shape index: {}]  }
   0x1   :  { %15 = vsyncpa [#allocation4 + $0x1], 0  ;;  %s2107_s27 = smov 0   ;;  %s2109_s28 = smov 0  }
   0x2   :  { %s2111_s29 = smov 0   ;;  %s2113_s30 = smov 0  }
   0x3 LB: > { %s2627_s9 = sadd.s32 4294967295, %s2048_s30   ;;  %s1805_s10 = sadd.s32 4294967294, %s2048_s30   ;;  %s2048_s30 = sphi %s2113_s30, %s2638_s30   ;;  %s2044_s29 = sphi %s2111_s29, %s2637_s29   ;;  %s2040_s28 = sphi %s2109_s28, %s2636_s28   ;;  %s2036_s27 = sphi %s2107_s27, %s2635_s27  }
   0x4   : > { %s2130_s11 = sadd.s32 1, %s2048_s30   ;;  %s28_s12 = sadd.s32 1, %s2044_s29 }
   0x5   : > { %s25_s13 = ssub.s32 %s2048_s30, %s2130_s11  ;;  %p35_p0 = scmp.ne.s32.totalorder %s2044_s29, %s2040_s28 }
   0x6   : > { %p26_p1 = scmp.eq.s32.totalorder %s25_s13, 0  ;;  %p36_p2 = scmp.eq.s32.totalorder %s2048_s30, 0 }
   0x7   : > { %p212_p3 = scmp.eq.s32.totalorder %s2627_s9, 1  ;;  %p217_p4 = scmp.ne.s32.totalorder %s2040_s28, %s2036_s27 }
   0x8   : > { %s2143_s14 = scalar_select %p26_p1, %s2044_s29, %s28_s12  }
   0x9   : > { %p37_p5 = por %p36_p2, %p35_p0  ;;  %p2145_p6 = por %p212_p3, %p35_p0 }
   0xa   : > { %p218_p7 = scmp.eq.s32.totalorder %s1805_s10, 1  ;;  %p1807_p9 = scmp.ge.s32.totalorder %s2048_s30, 2 }
   0xc   : > { %p2149_p8 = por %p218_p7, %p217_p4  ;;  %255 = sbr.rel (%p1807_p9) target bundleno = 26 (0x1a), region = 44 }
  0x13   : > { %258 = sbr.rel (!%p37_p5) target bundleno = 26 (0x1a), region = 48  ;;  %s260_s17 = sand.u32 (%p37_p5), 1, %s2044_s29  }
  0x14   : > { %s1891_s18 = sshll.u32 (%p37_p5), %s2048_s30, 4  ;;  %s1808_s19 = sshll.u32 (%p37_p5), %s260_s17, 5 }
  0x15   : > { %s265_s22 = scalar_lea.vmem (%p37_p5), %s2617_s0, %s1891_s18  ;;  %s262_s23 = scalar_lea.vmem (%p37_p5), [#allocation2], %s1808_s19 }
  0x16   : > { %v278_v0 = vld [vmem:[%s265_s22] sm:$0xff] (%p37_p5)  ;;  %v280_v1 = vld [vmem:[%s265_s22 + $0x8] sm:$0xff] (%p37_p5) }
  0x17   : > { %v282_v2 = vld [vmem:[%s265_s22 + $0x20] sm:$0xff] (%p37_p5)  ;;  %279 = vst [vmem:[%s262_s23] sm:$0xff] (%p37_p5), %v278_v0  ;;  %281 = vst [vmem:[%s262_s23 + $0x8] sm:$0xff] (%p37_p5), %v280_v1  ;;  %v284_v3 = vld [vmem:[%s265_s22 + $0x28] sm:$0xff] (%p37_p5) }
  0x18   : > { %283 = vst [vmem:[%s262_s23 + $0x10] sm:$0xff] (%p37_p5), %v282_v2  ;;  %285 = vst [vmem:[%s262_s23 + $0x18] sm:$0xff] (%p37_p5), %v284_v3 }
  0x1a PF: > { %p1811_p10 = scmp.ge.s32.totalorder %s2048_s30, 1  ;;  %p290_p11 = scmp.lt.s32.totalorder %s2048_s30, 3 }
  0x1c   : > { %p291_p12 = pnand %p1811_p10, %p290_p11 }
  0x1d   : > { %s2626_s24 = sand.u32 (!%p291_p12), 1, %s2040_s28   ;;  %v2050_v4 = vmov (!%p291_p12), 0   ;;  %v344_v5 = vld [vmem:[%s2622_s5] sm:$0xf] (!%p291_p12)  ;;  %vm350_vm0 = vcmask (!%p291_p12), 130048   ;;  %s2051_s18 = smov (!%p291_p12), 17   ;;  %v406_v23 = vlaneseq (!%p291_p12) }
  0x1e   : > { %294 = sbr.rel (%p291_p12) target bundleno = 1111 (0x457), region = 71  ;;  %s2166_s25 = sshll.u32 (!%p291_p12), %s2626_s24, 5  ;;  %386 = vmatprep.mubr.bf16.mxu1 (!%p291_p12), %v2050_v4  ;;  %1975 = vset.pattern.permute.xlu0 (!%p291_p12), %v2050_v4  ;;  %v341_v12 = vld [vmem:[%s2618_s1] sm:$0x3] (!%p291_p12)  ;;  %v2244_v28 = vld [vmem:[%s2621_s4 + $0x8] sm:$0xff] (!%p291_p12)  ;;  %vm428_vm3 = vcmask (!%p291_p12), 1041408  }
  0x1f   : > { %347 = vperm.xlu0 (!%p291_p12), %1975, %v344_v5   ;;  %953 = vmatprep.mubr.bf16.mxu0 (!%p291_p12), %v2050_v4  ;;  %s299_s12 = scalar_lea.vmem (!%p291_p12), [#allocation2], %s2166_s25  ;;  %s2052_s19 = smov (!%p291_p12), 16   ;;  %v397_v22 = vld [vmem:[%s2623_s6] sm:$0xf] (!%p291_p12)  ;;  %v2231_v24 = vshrl.u32 (!%p291_p12), %v406_v23, 7  ;;  %v2233_v25 = vand.u32 (!%p291_p12), 127, %v406_v23 }
  0x20   : > { %v2175_v6 = vld [vmem:[%s299_s12 + $0x8] sm:$0xff] (!%p291_p12)  ;;  %v2177_v7 = vld [vmem:[%s299_s12 + $0x18] sm:$0xff] (!%p291_p12)  ;;  %v2179_v8 = vld [vmem:[%s299_s12] sm:$0xff] (!%p291_p12)  ;;  %1976 = vset.pattern.permute.xlu1 (!%p291_p12), %v2050_v4  ;;  %s2053_s20 = smov (!%p291_p12), 15   ;;  %s2054_s21 = smov (!%p291_p12), 1   ;;  %vm424_vm4 = vcmask (!%p291_p12), 31744  }
  0x21   : > { %v343_v9 = vpack.c.bf16 (!%p291_p12), %v2177_v7, %v2175_v6  ;;  %v2184_v10 = vld [vmem:[%s299_s12 + $0x10] sm:$0xff] (!%p291_p12)  ;;  %s2055_s22 = smov (!%p291_p12), 127   ;;  %s2056_s23 = smov (!%p291_p12), 113   ;;  %v413_v26 = vsub.s32 (!%p291_p12), 0, %v2231_v24  ;;  %v2239_v27 = vld [vmem:[%s2621_s4] sm:$0xff] (!%p291_p12)  ;;  %vm408_vm1 = vcmp.lt.s32.totalorder (!%p291_p12), %v2233_v25, 17 }
  0x22   : > { %v342_v11 = vpack.c.bf16 (!%p291_p12), %v2184_v10, %v2179_v8  ;;  %s2628_s26 = smov (!%p291_p12), 112   ;;  %s2058_s10 = smov (!%p291_p12), 111   ;;  %v535_v31 = vsub.s32 (!%p291_p12), 1, %v2231_v24  ;;  %vm530_vm2 = vcmp.lt.s32.totalorder (!%p291_p12), %v2233_v25, 16  ;;  %v608_v45 = vsub.s32 (!%p291_p12), 2, %v2231_v24 }
  0x23   : > { %354 = vmatprep.subr.bf16.mxu1 (!%p291_p12), %v343_v9  ;;  %v2248_v29 = vrot.slane (!%p291_p12), %v2239_v27, %v413_v26  ;;  %v2251_v30 = vrot.slane (!%p291_p12), %v2244_v28, %v413_v26  ;;  %v423_v52 = vld [vmem:[%s2619_s2] sm:$0x3] (!%p291_p12)  ;;  %vm603_vm5 = vcmp.lt.s32.totalorder (!%p291_p12), %v2233_v25, 15  ;;  %v681_v0 = vsub.s32 (!%p291_p12), 3, %v2231_v24  ;;  %v1815_v3 = vld [vmem:[%s2619_s2 + $0x8] sm:$0x3] (!%p291_p12) }
  0x24   : > { %355 = vmatpush1.bf16.msra.mxu1 (!%p291_p12), %v342_v11  ;;  %v2262_v38 = vrot.slane (!%p291_p12), %v2244_v28, %v535_v31  ;;  %v2265_v43 = vrot.slane (!%p291_p12), %v2239_v27, %v535_v31  ;;  %v2286_v56 = vrot.slane (!%p291_p12), %v2244_v28, %v608_v45  ;;  %v2295_v62 = vrot.slane (!%p291_p12), %v2239_v27, %v608_v45  ;;  %s329_s12 = scalar_lea.vmem (!%p291_p12), [#allocation3], %s2166_s25  ;;  %s2059_s9 = smov (!%p291_p12), [#allocation3]  }
  0x25   : > { %vm676_vm6 = vcmp.lt.s32.totalorder %v2233_v25, 1  ;;  %v900_v9 = vsub.s32 7, %v2231_v24  ;;  %vm895_vm7 = vcmp.lt.s32.totalorder %v2233_v25, 112  ;;  %vm749_vm8 = vcmp.lt.s32.totalorder %v2233_v25, 127  ;;  %s1990_s24 = sshll.u32 %s2059_s9, 4  ;;  %s1991_s24 = int_to_ptr.vmem [resolvable:$false] %s1990_s24 }
  0x26   : > { %vm822_vm9 = vcmp.lt.s32.totalorder %v2233_v25, 113  ;;  %vm968_vm10 = vcmp.lt.s32.totalorder %v2233_v25, 111  ;;  %v1985_v25 = vld [vmem:[%s2620_s3 + $0x40] sm:$0xff]  }
  0x27   : > { %1814 = vmatmul.mubr.msk.bf16.vlgmr.msra.gmra.mrb[0].mxu1 %vm350_vm0, %v341_v12  ;;  %v2328_v26 = vrot.slane %v2244_v28, %v900_v9 }
  0x28   : > { %467 = vmatprep.mubr.bf16.mxu1 %v2050_v4 }
  0x9e   : > { %v348_v13 = vpop.permute.xlu0 %347 }
  0xfa   : > { %v388_v14 = vpop.f32.mrb[0].mxu1 }
  0xfb   : > { %v389_v15 = vadd.f32 %v388_v14, %v348_v13  ;;  %v390_v16 = vpop.f32.mrb[1].mxu1 }
  0xfc   : > { %v391_v17 = vadd.f32 %v390_v16, %v348_v13  ;;  %v392_v18 = vpop.f32.mrb[2].mxu1  ;;  %v2308_v13 = vrot.slane %v2244_v28, %v681_v0 }
  0xfd   : > { %v2192_v19 = vmax.f32 %v389_v15, 0.0  ;;  %v393_v20 = vpop.f32.mrb[3].mxu1  ;;  %v2317_v18 = vrot.slane %v2239_v27, %v681_v0  ;;  %v1826_v0 = vld [vmem:[%s2619_s2 + $0x6] sm:$0x3] }
  0xfe   : > { %v2194_v21 = vmax.f32 %v391_v17, 0.0  ;;  %v2322_v20 = vrot.slane %v2239_v27, %v900_v9  ;;  %v2394_v9 = vld [vmem:[%s2621_s4 + $0x18] ss:$0 sm:$0xff] }
  0xff   : > { %402 = vrot.lane.b32.xlu0 %v2192_v19, %s2051_s18  ;;  %v400_v49 = vpack.c.bf16 %v2192_v19, %v2192_v19 }
 0x100   : > { %404 = vrot.lane.b32.xlu1 %v2194_v21, %s2051_s18  ;;  %v401_v48 = vpack.c.bf16 %v2194_v21, %v2194_v21 }
 0x101   : > { %v480_v57 = vsel %vm428_vm3, %v400_v49, 0 }
 0x103   : > { %528 = vrot.lane.b32.xlu0 %v2194_v21, %s2052_s19 }
 0x104   : > { %526 = vrot.lane.b32.xlu1 %v2192_v19, %s2052_s19 }
 0x107   : > { %601 = vrot.lane.b32.xlu0 %v2194_v21, %s2053_s20 }
 0x108   : > { %599 = vrot.lane.b32.xlu1 %v2192_v19, %s2053_s20 }
 0x10b   : > { %674 = vrot.lane.b32.xlu0 %v2194_v21, %s2054_s21 }
 0x10c   : > { %672 = vrot.lane.b32.xlu1 %v2192_v19, %s2054_s21 }
 0x10f   : > { %747 = vrot.lane.b32.xlu0 %v2194_v21, %s2055_s22 }
 0x110   : > { %745 = vrot.lane.b32.xlu1 %v2192_v19, %s2055_s22 }
 0x113   : > { %820 = vrot.lane.b32.xlu0 %v2194_v21, %s2056_s23 }
 0x114   : > { %818 = vrot.lane.b32.xlu1 %v2192_v19, %s2056_s23 }
 0x117   : > { %893 = vrot.lane.b32.xlu0 %v2194_v21, %s2628_s26 }
 0x118   : > { %891 = vrot.lane.b32.xlu1 %v2192_v19, %s2628_s26  ;;  %s1992_s26 = scalar_lea.vmem %s1991_s24, 1024 }
 0x11b   : > { %966 = vrot.lane.b32.xlu0 %v2194_v21, %s2058_s10 }
 0x11c   : > { %964 = vrot.lane.b32.xlu1 %v2192_v19, %s2058_s10  ;;  %v754_v19 = vsub.s32 5, %v2231_v24 }
 0x120   : > { %1039 = vperm.xlu1 %1976, %v397_v22  }
 0x171   : > { %v403_v32 = vpop.permute.xlu0 %402 }
 0x172   : > { %v405_v33 = vpop.permute.xlu1 %404 }
 0x173   : > { %v409_v34 = vsel %vm408_vm1, %v403_v32, %v405_v33  ;;  %v410_v35 = vsel %vm408_vm1, %v405_v33, %v403_v32  ;;  %v1820_v32 = vld [vmem:[%s2619_s2 + $0x2] sm:$0x3] }
 0x174   : > { %v419_v36 = vmul.f32 %v2248_v29, %v410_v35  ;;  %v420_v37 = vmul.f32 %v2251_v30, %v409_v34  ;;  %v2336_v35 = vrot.slane %v2244_v28, %v754_v19 }
 0x175   : > { %v529_v39 = vpop.permute.xlu0 %528 }
 0x176   : > { %v421_v40 = vpack.c.bf16 %v419_v36, %v419_v36  ;;  %v422_v41 = vpack.c.bf16 %v420_v37, %v420_v37  ;;  %v527_v42 = vpop.permute.xlu1 %526 }
 0x177   : > { %v531_v44 = vsel %vm530_vm2, %v527_v42, %v529_v39  ;;  %v532_v50 = vsel %vm530_vm2, %v529_v39, %v527_v42 }
 0x178   : > { %v542_v46 = vmul.f32 %v2262_v38, %v531_v44  ;;  %1816 = vmatprep.subr.msk.bf16.mxu1 %vm428_vm3, %v422_v41  ;;  %v430_v47 = vsel %vm428_vm3, %v421_v40, 0  ;;  %v541_v54 = vmul.f32 %v2265_v43, %v532_v50  ;;  %v827_v50 = vsub.s32 6, %v2231_v24 }
 0x179   : > { %436 = vmatpush1.bf16.msra.mxu1 %v430_v47  ;;  %v602_v51 = vpop.permute.xlu0 %601  ;;  %v2351_v47 = vrot.slane %v2239_v27, %v754_v19 }
 0x17a   : > { %v600_v53 = vpop.permute.xlu1 %599  ;;  %1818 = vmatprep.subr.msk.bf16.mxu1 %vm428_vm3, %v401_v48  ;;  %v544_v55 = vpack.c.bf16 %v542_v46, %v542_v46  ;;  %v543_v61 = vpack.c.bf16 %v541_v54, %v541_v54  ;;  %v1835_v54 = vld [vmem:[%s2619_s2 + $0xe] sm:$0x3] }
 0x17b   : > { %v604_v58 = vsel %vm603_vm5, %v600_v53, %v602_v51  ;;  %v605_v1 = vsel %vm603_vm5, %v602_v51, %v600_v53  ;;  %v1823_v53 = vld [vmem:[%s2619_s2 + $0x4] sm:$0x3] }
 0x17c   : > { %1817 = vmatmul.mubr.msk.bf16.vlgmr.msra.gmra.mrb[4].mxu1 %vm424_vm4, %v423_v52  ;;  %v615_v63 = vmul.f32 %v2286_v56, %v604_v58  ;;  %v614_v11 = vmul.f32 %v2295_v62, %v605_v1  ;;  %v551_v14 = vsel %vm428_vm3, %v543_v61, 0 }
 0x17d   : > { %v675_v59 = vpop.permute.xlu0 %674  ;;  %486 = vmatpush1.bf16.msra.mxu1 %v480_v57  ;;  %517 = vmatprep.mubr.bf16.mxu1 %v2050_v4  ;;  %v2368_v57 = vrot.slane %v2244_v28, %v827_v50  ;;  %v2379_v28 = vrot.slane %v2239_v27, %v827_v50 }
 0x17e   : > { %v673_v60 = vpop.permute.xlu1 %672  ;;  %1821 = vmatprep.subr.msk.bf16.mxu1 %vm428_vm3, %v544_v55  ;;  %v617_v12 = vpack.c.bf16 %v615_v63, %v615_v63  ;;  %v616_v21 = vpack.c.bf16 %v614_v11, %v614_v11 }
 0x17f   : > { %v677_v15 = vsel %vm676_vm6, %v673_v60, %v675_v59  ;;  %v678_v22 = vsel %vm676_vm6, %v675_v59, %v673_v60 }
 0x180   : > { %v688_v23 = vmul.f32 %v2308_v13, %v677_v15  ;;  %v687_v34 = vmul.f32 %v2317_v18, %v678_v22  ;;  %v624_v41 = vsel %vm428_vm3, %v616_v21, 0  ;;  %v2404_v15 = vld [vmem:[%s2621_s4 + $0x10] ss:$0 sm:$0xff] }
 0x181   : > { %v748_v2 = vpop.permute.xlu0 %747 }
 0x182   : > { %v746_v5 = vpop.permute.xlu1 %745  ;;  %v690_v39 = vpack.c.bf16 %v688_v23, %v688_v23  ;;  %v689_v48 = vpack.c.bf16 %v687_v34, %v687_v34 }
 0x183   : > { %v751_v44 = vsel %vm749_vm8, %v748_v2, %v746_v5  ;;  %v750_v52 = vsel %vm749_vm8, %v746_v5, %v748_v2 }
 0x184   : > { %1819 = vmatmul.mubr.msk.bf16.vlgmr.msra.gmra.mrb[8].mxu1 %vm424_vm4, %v1815_v3  ;;  %v761_v49 = vmul.f32 %v2336_v35, %v751_v44  ;;  %v760_v24 = vmul.f32 %v2351_v47, %v750_v52  ;;  %v697_v58 = vsel %vm428_vm3, %v689_v48, 0 }
 0x185   : > { %557 = vmatpush1.bf16.msra.mxu1 %v551_v14  ;;  %v821_v16 = vpop.permute.xlu0 %820  ;;  %588 = vmatprep.mubr.bf16.mxu1 %v2050_v4 }
 0x186   : > { %1824 = vmatprep.subr.msk.bf16.mxu1 %vm428_vm3, %v617_v12  ;;  %v819_v17 = vpop.permute.xlu1 %818  ;;  %v763_v55 = vpack.c.bf16 %v761_v49, %v761_v49  ;;  %v762_v60 = vpack.c.bf16 %v760_v24, %v760_v24 }
 0x187   : > { %v824_v59 = vsel %vm822_vm9, %v821_v16, %v819_v17  ;;  %v823_v63 = vsel %vm822_vm9, %v819_v17, %v821_v16  ;;  %v1829_v17 = vld [vmem:[%s2619_s2 + $0xa] sm:$0x3] }
 0x188   : > { %v834_v61 = vmul.f32 %v2368_v57, %v824_v59  ;;  %v833_v3 = vmul.f32 %v2379_v28, %v823_v63  ;;  %v770_v27 = vsel %vm428_vm3, %v762_v60, 0 }
 0x189   : > { %v894_v31 = vpop.permute.xlu0 %893 }
 0x18a   : > { %v892_v33 = vpop.permute.xlu1 %891  ;;  %v836_v5 = vpack.c.bf16 %v834_v61, %v834_v61  ;;  %v835_v12 = vpack.c.bf16 %v833_v3, %v833_v3 }
 0x18b   : > { %v896_v36 = vsel %vm895_vm7, %v892_v33, %v894_v31  ;;  %v897_v37 = vsel %vm895_vm7, %v894_v31, %v892_v33  ;;  %v1832_v31 = vld [vmem:[%s2619_s2 + $0xc] sm:$0x3]  ;;  %v1840_v33 = vld [vmem:[%s2619_s2 + $0x10] sm:$0x3] }
 0x18c   : > { %v906_v40 = vmul.f32 %v2322_v20, %v896_v36  ;;  %1822 = vmatmul.mubr.msk.bf16.vlgmr.msra.gmra.mrb[12].mxu1 %vm424_vm4, %v1820_v32  ;;  %v907_v42 = vmul.f32 %v2328_v26, %v897_v37  ;;  %v843_v22 = vsel %vm428_vm3, %v835_v12, 0 }
 0x18d   : > { %630 = vmatpush1.bf16.msra.mxu1 %v624_v41  ;;  %661 = vmatprep.mubr.bf16.mxu1 %v2050_v4  ;;  %v967_v1 = vpop.permute.xlu0 %966 }
 0x18e   : > { %1827 = vmatprep.subr.msk.bf16.mxu1 %vm428_vm3, %v690_v39  ;;  %v909_v45 = vpack.c.bf16 %v907_v42, %v907_v42  ;;  %v908_v46 = vpack.c.bf16 %v906_v40, %v906_v40  ;;  %v965_v2 = vpop.permute.xlu1 %964 }
 0x18f   : > { %v970_v11 = vsel %vm968_vm10, %v967_v1, %v965_v2  ;;  %v969_v16 = vsel %vm968_vm10, %v965_v2, %v967_v1 }
 0x190   : > { %1836 = vmatprep.subr.msk.bf16.mxu0 %vm428_vm3, %v909_v45  ;;  %v916_v51 = vsel %vm428_vm3, %v908_v46, 0  ;;  %v980_v14 = vmul.f32 %v2394_v9, %v970_v11  ;;  %v979_v19 = vmul.f32 %v2404_v15, %v969_v16 }
 0x191   : > { %922 = vmatpush1.bf16.msra.mxu0 %v916_v51 }
 0x192   : > { %v982_v21 = vpack.c.bf16 %v980_v14, %v980_v14  ;;  %v981_v23 = vpack.c.bf16 %v979_v19, %v979_v19 }
 0x194   : > { %1825 = vmatmul.mubr.msk.bf16.vlgmr.msra.gmra.mrb[16].mxu1 %vm424_vm4, %v1823_v53  ;;  %1837 = vmatmul.mubr.msk.bf16.vlgmr.msra.gmra.mrb[0].mxu0 %vm424_vm4, %v1835_v54  ;;  %v989_v32 = vsel %vm428_vm3, %v981_v23, 0 }
 0x195   : > { %703 = vmatpush1.bf16.msra.mxu1 %v697_v58  ;;  %734 = vmatprep.mubr.bf16.mxu1 %v2050_v4 }
 0x196   : > { %1830 = vmatprep.subr.msk.bf16.mxu1 %vm428_vm3, %v763_v55  ;;  %1111 = vmatprep.mubr.bf16.mxu0 %v2050_v4 }
 0x19c   : > { %1828 = vmatmul.mubr.msk.bf16.vlgmr.msra.gmra.mrb[20].mxu1 %vm424_vm4, %v1826_v0 }
 0x19d   : > { %776 = vmatpush1.bf16.msra.mxu1 %v770_v27  ;;  %807 = vmatprep.mubr.bf16.mxu1 %v2050_v4 }
 0x19e   : > { %1833 = vmatprep.subr.msk.bf16.mxu1 %vm428_vm3, %v836_v5 }
 0x1a4   : > { %1831 = vmatmul.mubr.msk.bf16.vlgmr.msra.gmra.mrb[24].mxu1 %vm424_vm4, %v1829_v17 }
 0x1a5   : > { %849 = vmatpush1.bf16.msra.mxu1 %v843_v22  ;;  %880 = vmatprep.mubr.bf16.mxu1 %v2050_v4 }
 0x1a6   : > { %1841 = vmatprep.subr.msk.bf16.mxu1 %vm428_vm3, %v982_v21 }
 0x1ac   : > { %1834 = vmatmul.mubr.msk.bf16.vlgmr.msra.gmra.mrb[28].mxu1 %vm424_vm4, %v1832_v31 }
 0x1ad   : > { %995 = vmatpush1.bf16.msra.mxu1 %v989_v32  ;;  %1026 = vmatprep.mubr.bf16.mxu1 %v2050_v4 }
 0x1b4   : > { %1842 = vmatmul.mubr.msk.bf16.vlgmr.msra.gmra.mrb[32].mxu1 %vm424_vm4, %v1840_v33 }
 0x24f   : > { %v469_v34 = vpop.f32.mrb[4].mxu1 }
 0x250   : > { %v471_v36 = vpop.f32.mrb[5].mxu1 }
 0x251   : > { %v473_v37 = vpop.f32.mrb[6].mxu1 }
 0x252   : > { %v474_v39 = vpop.f32.mrb[7].mxu1 }
 0x257   : > { %v519_v40 = vpop.f32.mrb[8].mxu1 }
 0x258   : > { %v520_v41 = vadd.f32 %v519_v40, %v469_v34  ;;  %v521_v42 = vpop.f32.mrb[9].mxu1 }
 0x259   : > { %v522_v44 = vadd.f32 %v521_v42, %v471_v36  ;;  %v523_v45 = vpop.f32.mrb[10].mxu1 }
 0x25a   : > { %v524_v46 = vpop.f32.mrb[11].mxu1 }
 0x25f   : > { %v590_v48 = vpop.f32.mrb[12].mxu1 }
 0x260   : > { %v597_v49 = vadd.f32 %v590_v48, %v520_v41  ;;  %v592_v50 = vpop.f32.mrb[13].mxu1  ;;  %v1040_v41 = vpop.permute.xlu1 %1039 }
 0x261   : > { %v598_v51 = vadd.f32 %v592_v50, %v522_v44  ;;  %v594_v52 = vpop.f32.mrb[14].mxu1 }
 0x262   : > { %v595_v53 = vpop.f32.mrb[15].mxu1 }
 0x263   : > { %v1046_v53 = vld [vmem:[%s2624_s7] sm:$0xff] }
 0x267   : > { %v663_v54 = vpop.f32.mrb[16].mxu1  ;;  %v955_v24 = vpop.f32.mrb[0].mxu0 }
 0x268   : > { %v670_v55 = vadd.f32 %v663_v54, %v597_v49  ;;  %v665_v58 = vpop.f32.mrb[17].mxu1  ;;  %v957_v59 = vpop.f32.mrb[1].mxu0  ;;  %v1047_v54 = vld [vmem:[%s2624_s7 + $0x8] sm:$0xff] }
 0x269   : > { %v671_v60 = vadd.f32 %v665_v58, %v598_v51  ;;  %v667_v61 = vpop.f32.mrb[18].mxu1  ;;  %v959_v63 = vpop.f32.mrb[2].mxu0 }
 0x26a   : > { %v668_v0 = vpop.f32.mrb[19].mxu1  ;;  %v960_v1 = vpop.f32.mrb[3].mxu0 }
 0x26f   : > { %v736_v2 = vpop.f32.mrb[20].mxu1 }
 0x270   : > { %v743_v3 = vadd.f32 %v736_v2, %v670_v55  ;;  %v738_v5 = vpop.f32.mrb[21].mxu1 }
 0x271   : > { %v744_v27 = vadd.f32 %v738_v5, %v671_v60  ;;  %v740_v11 = vpop.f32.mrb[22].mxu1 }
 0x272   : > { %v741_v12 = vpop.f32.mrb[23].mxu1 }
 0x277   : > { %v809_v14 = vpop.f32.mrb[24].mxu1 }
 0x278   : > { %v816_v16 = vadd.f32 %v809_v14, %v743_v3  ;;  %v811_v17 = vpop.f32.mrb[25].mxu1 }
 0x279   : > { %v817_v19 = vadd.f32 %v811_v17, %v744_v27  ;;  %v813_v21 = vpop.f32.mrb[26].mxu1 }
 0x27a   : > { %v814_v22 = vpop.f32.mrb[27].mxu1 }
 0x27f   : > { %v882_v23 = vpop.f32.mrb[28].mxu1 }
 0x280   : > { %v889_v31 = vadd.f32 %v882_v23, %v816_v16  ;;  %v884_v32 = vpop.f32.mrb[29].mxu1 }
 0x281   : > { %v890_v33 = vadd.f32 %v884_v32, %v817_v19  ;;  %v886_v34 = vpop.f32.mrb[30].mxu1 }
 0x282   : > { %v962_v36 = vadd.f32 %v955_v24, %v889_v31  ;;  %v887_v37 = vpop.f32.mrb[31].mxu1  ;;  %v1978_v31 = vld [vmem:[%s2620_s3 + $0x20] sm:$0xff]  }
 0x283   : > { %v963_v39 = vadd.f32 %v957_v59, %v890_v33 }
 0x287   : > { %v1028_v40 = vpop.f32.mrb[32].mxu1 }
 0x288   : > { %v1035_v42 = vadd.f32 %v1028_v40, %v962_v36  ;;  %v1030_v44 = vpop.f32.mrb[33].mxu1 }
 0x289   : > { %v1036_v45 = vadd.f32 %v1030_v44, %v963_v39  ;;  %v1032_v46 = vpop.f32.mrb[34].mxu1 }
 0x28a   : > { %v1042_v48 = vadd.f32 %v1040_v41, %v1035_v42  ;;  %v1033_v49 = vpop.f32.mrb[35].mxu1 }
 0x28b   : > { %v1043_v50 = vadd.f32 %v1040_v41, %v1036_v45  ;;  %v1979_v41 = vld [vmem:[%s2620_s3 + $0x8] sm:$0xff]  }
 0x28c   : > { %v1044_v51 = vmax.f32 %v1042_v48, 0.0 }
 0x28d   : > { %v1045_v52 = vmax.f32 %v1043_v50, 0.0 }
 0x28e   : > { %1053 = vrot.lane.b32.xlu0 %v1044_v51, %s2051_s18  ;;  %v1051_v12 = vpack.c.bf16 %v1044_v51, %v1044_v51 }
 0x28f   : > { %1055 = vrot.lane.b32.xlu1 %v1045_v52, %s2051_s18  ;;  %s2632_s18 = smov 112   ;;  %v1052_v11 = vpack.c.bf16 %v1045_v52, %v1045_v52 }
 0x290   : > { %v1131_v14 = vsel %vm428_vm3, %v1051_v12, 0 }
 0x292   : > { %1179 = vrot.lane.b32.xlu0 %v1044_v51, %s2052_s19 }
 0x293   : > { %1181 = vrot.lane.b32.xlu1 %v1045_v52, %s2052_s19 }
 0x296   : > { %1253 = vrot.lane.b32.xlu0 %v1044_v51, %s2053_s20 }
 0x297   : > { %1255 = vrot.lane.b32.xlu1 %v1045_v52, %s2053_s20  ;;  %s2633_s20 = sadd.s32 4294967295, %s2048_s30  }
 0x298   : > { %s1892_s13 = sshll.u32 %s2633_s20, 8 }
 0x299   : > { %s2570_s17 = scalar_lea.hbm %s2625_s8, %s1892_s13 }
 0x29a   : > { %1327 = vrot.lane.b32.xlu0 %v1044_v51, %s2054_s21 }
 0x29b   : > { %1329 = vrot.lane.b32.xlu1 %v1045_v52, %s2054_s21 }
 0x29e   : > { %1401 = vrot.lane.b32.xlu0 %v1044_v51, %s2055_s22 }
 0x29f   : > { %1403 = vrot.lane.b32.xlu1 %v1045_v52, %s2055_s22  ;;  %s2634_s22 = sand.u32 1, %s2040_s28  }
 0x2a2   : > { %1475 = vrot.lane.b32.xlu0 %v1044_v51, %s2056_s23 }
 0x2a3   : > { %1477 = vrot.lane.b32.xlu1 %v1045_v52, %s2056_s23  ;;  %s2574_s23 = scalar_lea.sflag [#allocation4], %s2634_s22 }
 0x2a6   : > { %1549 = vrot.lane.b32.xlu0 %v1044_v51, %s2632_s18 }
 0x2a7   : > { %1551 = vrot.lane.b32.xlu1 %v1045_v52, %s2632_s18  ;;  %s1737_s18 = sshll.u32 %s329_s12, 4  ;;  %s2565_s18 = int_to_ptr.vmem [resolvable:$true] %s1737_s18 }
 0x2a8   : > { %p1993_p2 = scmp.lt.s32.totalorder %s2565_s18, %s1991_s24 }
 0x2aa   : > { %1623 = vrot.lane.b32.xlu0 %v1044_v51, %s2058_s10  ;;  %v1980_v51 = vld [vmem:[%s2620_s3 + $0x10] sm:$0xff]  }
 0x2ab   : > { %1625 = vrot.lane.b32.xlu1 %v1045_v52, %s2058_s10  ;;  %s1986_s10 = scalar_lea.vmem %s2565_s18, 512 }
 0x2ac   : > { %p1987_p13 = scmp.ne.s32.totalorder %s2565_s18, %s1986_s10  ;;  %p1994_p3 = scmp.lt.s32.totalorder %s1992_s26, %s1986_s10 }
 0x2ae   : > { %1699 = vperm.xlu0 %1975, %v1046_v53   ;;  %p1988_p0 = pnand %p1987_p13, %p2145_p6  ;;  %p1995_p4 = por %p1994_p3, %p1993_p2 }
 0x2af   : > { %1704 = vperm.xlu1 %1976, %v1047_v54  }
 0x2b0   : > { %p1989_p1 = pneg %p1988_p0 }
 0x2b2   : > { %p1996_p5 = pnand %p1995_p4, %p1989_p1 }
 0x300   : > { %v1054_v24 = vpop.permute.xlu0 %1053 }
 0x301   : > { %v1056_v55 = vpop.permute.xlu1 %1055 }
 0x302   : > { %v1057_v58 = vsel %vm408_vm1, %v1054_v24, %v1056_v55  ;;  %v1058_v59 = vsel %vm408_vm1, %v1056_v55, %v1054_v24 }
 0x303   : > { %v1059_v60 = vmul.f32 %v1058_v59, %v2248_v29  ;;  %v1060_v61 = vmul.f32 %v1057_v58, %v2251_v30  ;;  %v1977_v29 = vld [vmem:[%s2620_s3] sm:$0xff]  }
 0x304   : > { %v1180_v63 = vpop.permute.xlu0 %1179 }
 0x305   : > { %v1061_v0 = vpack.c.bf16 %v1059_v60, %v1059_v60  ;;  %v1062_v1 = vpack.c.bf16 %v1060_v61, %v1060_v61  ;;  %v1182_v2 = vpop.permute.xlu1 %1181  ;;  %v1981_v60 = vld [vmem:[%s2620_s3 + $0x18] sm:$0xff]  }
 0x306   : > { %v1183_v3 = vsel %vm530_vm2, %v1180_v63, %v1182_v2 }
 0x307   : > { %v1186_v5 = vmul.f32 %v1183_v3, %v2262_v38  ;;  %1846 = vmatprep.subr.msk.bf16.mxu0 %vm428_vm3, %v1062_v1  ;;  %v1074_v27 = vsel %vm428_vm3, %v1061_v0, 0  ;;  %v1184_v38 = vsel %vm530_vm2, %v1182_v2, %v1180_v63 }
 0x308   : > { %1080 = vmatpush1.bf16.msra.mxu0 %v1074_v27  ;;  %v1254_v16 = vpop.permute.xlu0 %1253  ;;  %v1185_v19 = vmul.f32 %v1184_v38, %v2265_v43  ;;  %v1982_v27 = vld [vmem:[%s2620_s3 + $0x28] sm:$0xff]  }
 0x309   : > { %1849 = vmatprep.subr.msk.bf16.mxu0 %vm428_vm3, %v1052_v11  ;;  %v1188_v30 = vpack.c.bf16 %v1186_v5, %v1186_v5  ;;  %v1256_v17 = vpop.permute.xlu1 %1255 }
 0x30a   : > { %v1257_v21 = vsel %vm603_vm5, %v1254_v16, %v1256_v17  ;;  %v1187_v22 = vpack.c.bf16 %v1185_v19, %v1185_v19  ;;  %v1258_v34 = vsel %vm603_vm5, %v1256_v17, %v1254_v16  ;;  %v1983_v17 = vld [vmem:[%s2620_s3 + $0x30] sm:$0xff]  }
 0x30b   : > { %1847 = vmatmul.mubr.msk.bf16.vlgmr.msra.gmra.mrb[4].mxu0 %vm424_vm4, %v1977_v29  ;;  %v1260_v23 = vmul.f32 %v1257_v21, %v2286_v56  ;;  %v1259_v56 = vmul.f32 %v1258_v34, %v2295_v62 }
 0x30c   : > { %1137 = vmatpush1.bf16.msra.mxu0 %v1131_v14  ;;  %1168 = vmatprep.mubr.bf16.mxu0 %v2050_v4  ;;  %v1201_v33 = vsel %vm428_vm3, %v1187_v22, 0  ;;  %v1328_v43 = vpop.permute.xlu0 %1327 }
 0x30d   : > { %1854 = vmatprep.subr.msk.bf16.mxu0 %vm428_vm3, %v1188_v30  ;;  %v1262_v32 = vpack.c.bf16 %v1260_v23, %v1260_v23  ;;  %v1330_v36 = vpop.permute.xlu1 %1329  ;;  %v1261_v39 = vpack.c.bf16 %v1259_v56, %v1259_v56  ;;  %v1984_v23 = vld [vmem:[%s2620_s3 + $0x38] sm:$0xff]  }
 0x30e   : > { %v1331_v37 = vsel %vm676_vm6, %v1328_v43, %v1330_v36  ;;  %v1332_v45 = vsel %vm676_vm6, %v1330_v36, %v1328_v43 }
 0x30f   : > { %v1334_v40 = vmul.f32 %v1331_v37, %v2308_v13  ;;  %v1275_v44 = vsel %vm428_vm3, %v1261_v39, 0  ;;  %v1333_v13 = vmul.f32 %v1332_v45, %v2317_v18 }
 0x310   : > { %v1402_v62 = vpop.permute.xlu0 %1401 }
 0x311   : > { %v1336_v42 = vpack.c.bf16 %v1334_v40, %v1334_v40  ;;  %v1404_v46 = vpop.permute.xlu1 %1403  ;;  %v1335_v49 = vpack.c.bf16 %v1333_v13, %v1333_v13 }
 0x312   : > { %v1406_v48 = vsel %vm749_vm8, %v1404_v46, %v1402_v62  ;;  %v1405_v54 = vsel %vm749_vm8, %v1402_v62, %v1404_v46 }
 0x313   : > { %v1408_v50 = vmul.f32 %v1406_v48, %v2336_v35  ;;  %v1349_v53 = vsel %vm428_vm3, %v1335_v49, 0  ;;  %v1407_v35 = vmul.f32 %v1405_v54, %v2351_v47 }
 0x314   : > { %v1476_v18 = vpop.permute.xlu0 %1475 }
 0x315   : > { %v1410_v52 = vpack.c.bf16 %v1408_v50, %v1408_v50  ;;  %v1478_v24 = vpop.permute.xlu1 %1477  ;;  %v1409_v58 = vpack.c.bf16 %v1407_v35, %v1407_v35 }
 0x316   : > { %v1480_v55 = vsel %vm822_vm9, %v1478_v24, %v1476_v18  ;;  %v1479_v0 = vsel %vm822_vm9, %v1476_v18, %v1478_v24 }
 0x317   : > { %1850 = vmatmul.mubr.msk.bf16.vlgmr.msra.gmra.mrb[4].mxu0 %vm424_vm4, %v1978_v31  ;;  %v1482_v59 = vmul.f32 %v1480_v55, %v2368_v57  ;;  %v1423_v63 = vsel %vm428_vm3, %v1409_v58, 0  ;;  %v1481_v57 = vmul.f32 %v1479_v0, %v2379_v28 }
 0x318   : > { %1207 = vmatpush1.bf16.msra.mxu0 %v1201_v33  ;;  %1238 = vmatprep.mubr.bf16.mxu0 %v2050_v4  ;;  %v1550_v47 = vpop.permute.xlu0 %1549 }
 0x319   : > { %1859 = vmatprep.subr.msk.bf16.mxu0 %vm428_vm3, %v1262_v32  ;;  %v1484_v61 = vpack.c.bf16 %v1482_v59, %v1482_v59  ;;  %v1552_v1 = vpop.permute.xlu1 %1551  ;;  %v1483_v3 = vpack.c.bf16 %v1481_v57, %v1481_v57 }
 0x31a   : > { %v1554_v2 = vsel %vm895_vm7, %v1552_v1, %v1550_v47  ;;  %v1553_v12 = vsel %vm895_vm7, %v1550_v47, %v1552_v1 }
 0x31b   : > { %v1556_v5 = vmul.f32 %v1554_v2, %v2328_v26  ;;  %v1497_v29 = vsel %vm428_vm3, %v1483_v3, 0  ;;  %v1555_v26 = vmul.f32 %v1553_v12, %v2322_v20 }
 0x31c   : > { %v1624_v28 = vpop.permute.xlu0 %1623 }
 0x31d   : > { %v1558_v11 = vpack.c.bf16 %v1556_v5, %v1556_v5  ;;  %v1626_v30 = vpop.permute.xlu1 %1625  ;;  %v1557_v38 = vpack.c.bf16 %v1555_v26, %v1555_v26 }
 0x31e   : > { %v1628_v14 = vsel %vm968_vm10, %v1626_v30, %v1624_v28  ;;  %v1627_v22 = vsel %vm968_vm10, %v1624_v28, %v1626_v30 }
 0x31f   : > { %v1630_v16 = vmul.f32 %v2394_v9, %v1628_v14  ;;  %v1571_v21 = vsel %vm428_vm3, %v1557_v38, 0  ;;  %v1629_v20 = vmul.f32 %v2404_v15, %v1627_v22 }
 0x321   : > { %v1632_v19 = vpack.c.bf16 %v1630_v16, %v1630_v16  ;;  %v1631_v9 = vpack.c.bf16 %v1629_v20, %v1629_v20 }
 0x323   : > { %1855 = vmatmul.mubr.msk.bf16.vlgmr.msra.gmra.mrb[4].mxu0 %vm424_vm4, %v1979_v41  ;;  %v1645_v31 = vsel %vm428_vm3, %v1631_v9, 0 }
 0x324   : > { %1281 = vmatpush1.bf16.msra.mxu0 %v1275_v44  ;;  %1312 = vmatprep.mubr.bf16.mxu0 %v2050_v4 }
 0x325   : > { %1864 = vmatprep.subr.msk.bf16.mxu0 %vm428_vm3, %v1336_v42 }
 0x32d   : > { %v1700_v15 = vpop.permute.xlu0 %1699 }
 0x32e   : > { %v1705_v43 = vpop.permute.xlu1 %1704 }
 0x32f   : > { %1860 = vmatmul.mubr.msk.bf16.vlgmr.msra.gmra.mrb[4].mxu0 %vm424_vm4, %v1980_v51 }
 0x330   : > { %1355 = vmatpush1.bf16.msra.mxu0 %v1349_v53  ;;  %1386 = vmatprep.mubr.bf16.mxu0 %v2050_v4 }
 0x331   : > { %1869 = vmatprep.subr.msk.bf16.mxu0 %vm428_vm3, %v1410_v52 }
 0x33b   : > { %1865 = vmatmul.mubr.msk.bf16.vlgmr.msra.gmra.mrb[4].mxu0 %vm424_vm4, %v1981_v60 }
 0x33c   : > { %1429 = vmatpush1.bf16.msra.mxu0 %v1423_v63  ;;  %1460 = vmatprep.mubr.bf16.mxu0 %v2050_v4 }
 0x33d   : > { %1874 = vmatprep.subr.msk.bf16.mxu0 %vm428_vm3, %v1484_v61 }
 0x347   : > { %1870 = vmatmul.mubr.msk.bf16.vlgmr.msra.gmra.mrb[4].mxu0 %vm424_vm4, %v1982_v27 }
 0x348   : > { %1503 = vmatpush1.bf16.msra.mxu0 %v1497_v29  ;;  %1534 = vmatprep.mubr.bf16.mxu0 %v2050_v4 }
 0x349   : > { %1879 = vmatprep.subr.msk.bf16.mxu0 %vm428_vm3, %v1558_v11 }
 0x353   : > { %1875 = vmatmul.mubr.msk.bf16.vlgmr.msra.gmra.mrb[4].mxu0 %vm424_vm4, %v1983_v17 }
 0x354   : > { %1577 = vmatpush1.bf16.msra.mxu0 %v1571_v21  ;;  %1608 = vmatprep.mubr.bf16.mxu0 %v2050_v4 }
 0x355   : > { %1884 = vmatprep.subr.msk.bf16.mxu0 %vm428_vm3, %v1632_v19 }
 0x35f   : > { %1880 = vmatmul.mubr.msk.bf16.vlgmr.msra.gmra.mrb[4].mxu0 %vm424_vm4, %v1984_v23 }
 0x360   : > { %1651 = vmatpush1.bf16.msra.mxu0 %v1645_v31  ;;  %1682 = vmatprep.mubr.bf16.mxu0 %v2050_v4 }
 0x36b   : > { %1885 = vmatmul.mubr.msk.bf16.vlgmr.msra.gmra.mrb[4].mxu0 %vm424_vm4, %v1985_v25 }
 0x43e   : > { %v1684_v32 = vpop.f32.mrb[4].mxu0 }
 0x43f   : > { %v1707_v33 = vadd.f32 %v1700_v15, %v1684_v32  ;;  %v1686_v34 = vpop.f32.mrb[5].mxu0 }
 0x440   : > { %v1708_v36 = vadd.f32 %v1700_v15, %v1686_v34  ;;  %v1688_v56 = vpop.f32.mrb[6].mxu0 }
 0x441   : > { %v1711_v37 = vadd.f32 %v1707_v33, %v2179_v8  ;;  %v1709_v39 = vadd.f32 %v1705_v43, %v1688_v56  ;;  %v1690_v40 = vpop.f32.mrb[7].mxu0 }
 0x442   : > { %v1712_v4 = vadd.f32 %v1708_v36, %v2175_v6  ;;  %v1710_v41 = vadd.f32 %v1705_v43, %v1690_v40 }
 0x443   : > { %v1715_v42 = vmax.f32 %v1711_v37, 0.0  ;;  %v1713_v44 = vadd.f32 %v1709_v39, %v2184_v10 }
 0x444   : > { %v1716_v45 = vmax.f32 %v1712_v4, 0.0  ;;  %v1714_v62 = vadd.f32 %v1710_v41, %v2177_v7 }
 0x445   : > { %1719 = vst [vmem:[%s329_s12] sm:$0xff] %v1715_v42  ;;  %v1717_v8 = vmax.f32 %v1713_v44, 0.0 }
 0x446   : > { %1720 = vst [vmem:[%s329_s12 + $0x8] sm:$0xff] %v1716_v45  ;;  %v1718_v46 = vmax.f32 %v1714_v62, 0.0 }
 0x447   : > { %1721 = vst [vmem:[%s329_s12 + $0x10] sm:$0xff] %v1717_v8 }
 0x448   : > { %1722 = vst [vmem:[%s329_s12 + $0x18] sm:$0xff] %v1718_v46 }
 0x449   : > { %1999 = shalt.err (!%p1996_p5)
}
 0x44a   : > { %s2000_s12 = scalar_lea.hbm %s2570_s17, 512  ;;  %s2004_s25 = scalar_lea.hbm %s2625_s8, 1024 }
 0x44b   : > { %p2001_p7 = scmp.ne.s32.totalorder %s2570_s17, %s2000_s12  ;;  %p2005_p12 = scmp.lt.u32.totalorder %s2570_s17, %s2625_s8 }
 0x44c   : > { %p2006_p13 = scmp.lt.u32.totalorder %s2004_s25, %s2000_s12  ;;  %p2008_p1 = scmp.lt.u32.totalorder %s2000_s12, %s2570_s17 }
 0x44d   : > { %p2002_p10 = pnand %p2001_p7, %p2145_p6 }
 0x44e   : > { %p2007_p0 = por %p2006_p13, %p2005_p12 }
 0x44f   : > { %p2003_p11 = pneg %p2002_p10 }
 0x450   : > { %p2009_p2 = por %p2008_p1, %p2007_p0 }
 0x452   : > { %p2010_p3 = pnand %p2009_p2, %p2003_p11 }
 0x454   : > { %2013 = shalt.err (!%p2010_p3)
}
 0x455   : > { %s2060_s10 = smov 256   ;;  %s2061_s9 = smov 512  }
 0x456   : > { %1925 = dma.vmem_to_hbm [thread:$0]  (%p2145_p6), %s2565_s18, 512, %s2570_s17, %s2574_s23, %s2060_s10, %s2061_s9, %s2052_s19  }
 0x457 PF: > { %s1752_s24 = sand.u32 1, %s2036_s27   ;;  %p1928_p4 = pnand %p1807_p9, %p2149_p8 }
 0x458   : > { %s1753_s26 = scalar_lea.sflag [#allocation4], %s1752_s24 }
 0x459   : > { %2031 = dma.done.wait (!%p1928_p4), %s1753_s26, 512  }
 0x45a   : > { %2033 = vsyncadd (!%p1928_p4), %s1753_s26, 4294966784  ;;  %p18_p5 = scmp.ge.s32.totalorder %s2130_s11, 4   ;;  %s2635_s27 = smov %s2040_s28 }
 0x45b   : > { %s2636_s28 = smov %s2044_s29  ;;  %s2637_s29 = smov %s2143_s14 }
 0x45c   : > { %s2638_s30 = smov %s2130_s11  ;;  %20 = sbr.rel (!%p18_p5) target bundleno = 3 (0x3), region = 131 }
 0x463   :  { %1758 = vsyncpa [#allocation4], 1 }
 0x464   :  { %1760 = vsyncpa [#allocation4 + $0x1], 1 }

</bundles_post_ra>
